<compile_context>
chip_gen: v7x
topology: tpu7x:2x2x1
jax: 0.10.0
libtpu: 0.0.40
codegen_flags: <defaults>
</compile_context>

<pallas_src>
import functools
from math import ceil

import jax
import jax.numpy as jnp
import numpy as np
from jax.experimental import pallas as pl
from jax.experimental.pallas import tpu as pltpu

_EPS = 1e-5


# ---------------------------------------------------------------------------
# VMEM budgeting / tiling helpers
# ---------------------------------------------------------------------------
@functools.lru_cache(maxsize=None)
def _vmem_limit_bytes():
    """Scoped VMEM limit: <= 3/4 of per-core VMEM and <= 96 MiB (v5e/v6e have
    128 MiB physical, v7x has 64 MiB -> 48 MiB limit).  Falls back to a
    v7x-safe value when the query is unavailable (e.g. interpret mode)."""
    try:
        cap = int(pltpu.get_tpu_info().vmem_capacity_bytes)
    except Exception:
        cap = 64 * 1024 * 1024
    return int(min(cap * 3 // 4, 96 * 1024 * 1024))


def _pick_nb(n, per_img_bytes, budget_bytes):
    """Largest batch tile dividing n that fits the budget, capped so the grid
    has >= 2 steps when n >= 2 (so both v7x TensorCores get work)."""
    nb = max(1, min(n, budget_bytes // max(per_img_bytes, 1)))
    nb = min(nb, max(1, pl.cdiv(n, 2)))
    while n % nb:
        nb -= 1
    return nb


def _pick_tail_nb(n):
    """Batch tile for the 2-D-output tail kernel: a multiple of 8 (sublane rule
    for partial 2-D blocks) that gives >= 2 grid steps, else the full batch."""
    cand = [d for d in range(8, n // 2 + 1, 8) if n % d == 0]
    return max(cand) if cand else n


# ---------------------------------------------------------------------------
# Fused conv3x3 (+ input-BN fold, bias, residual, ReLU, BN statistics)
# ---------------------------------------------------------------------------
def _fused_conv_kernel(*refs, stride, res_mode):
    """One batch tile of: y = relu(conv3x3(x*a + b) + bias [+ shortcut]),
    plus per-lane partial (sum, sumsq) of y for the following BatchNorm.

    Packed layouts (lane dim = W*C):
      stride 1: x_ref (nb, H, W*Cin)
      stride 2: x_ref (nb, H/2, 2*W*Cin)  -- adjacent input-row pairs in lanes
      y_ref (nb, Ho, Wo*Cout); w_ref (3, W*Cin, Wo*Cout) Toeplitz slabs.
    """
    x_ref, a_ref, b_ref, w_ref, bias_ref = refs[:5]
    pos = 5
    if res_mode == 1:            # identity shortcut: elementwise r*ar + br
        r_ref, ar_ref, br_ref = refs[pos:pos + 3]
        pos += 3
    elif res_mode == 2:          # option-A downsample shortcut: selection matmul
        xr_ref, axr_ref, bxr_ref, s_ref = refs[pos:pos + 4]
        pos += 4
    y_ref, stat_ref = refs[pos], refs[pos + 1]

    nb = x_ref.shape[0]
    _, ho, nout = y_ref.shape
    rows = nb * ho
    kin = x_ref.shape[2] // stride          # per-input-row packed width (W*Cin)

    # 1) fold the previous BatchNorm into the input read (fp32 math, bf16 out).
    xn = (x_ref[...].astype(jnp.float32) * a_ref[...] + b_ref[...]
          ).astype(jnp.bfloat16)
    zrow = jnp.zeros((nb, 1, kin), jnp.bfloat16)

    # 2) per-kernel-row LHS slabs; H padding / stride handled with aligned lane
    #    slices, unit-stride row slices and a small concat (no strided Ref ops).
    if stride == 1:
        padded = jnp.concatenate([zrow, xn, zrow], axis=1)       # (nb, H+2, kin)
        lhs_rows = [padded[:, kh:kh + ho, :] for kh in range(3)]
    else:
        x_even = xn[:, :, :kin]                                  # input rows 0,2,...
        x_odd = xn[:, :, kin:]                                   # input rows 1,3,...
        lhs_rows = [
            jnp.concatenate([zrow, x_odd[:, :ho - 1, :]], axis=1),   # kh = 0
            x_even,                                                  # kh = 1
            x_odd,                                                   # kh = 2
        ]

    # 3) three MXU matmuls (bf16 x bf16 -> fp32 accumulation), bias pre-added.
    w = w_ref[...]                                               # (3, kin, nout)
    acc = jnp.zeros((rows, nout), jnp.float32) + bias_ref[...]
    for kh in range(3):
        acc = acc + jnp.dot(lhs_rows[kh].reshape(rows, kin), w[kh],
                            preferred_element_type=jnp.float32)

    # 4) shortcut, added before ReLU / BN2 exactly as in the reference block.
    if res_mode == 1:
        r = r_ref[...].reshape(rows, nout).astype(jnp.float32)
        acc = acc + r * ar_ref[...] + br_ref[...]
    elif res_mode == 2:
        kr = xr_ref.shape[2] // 2
        xr = xr_ref[...][:, :, :kr].astype(jnp.float32)          # even input rows
        xr = xr * axr_ref[...] + bxr_ref[...]                    # fold input BN
        acc = acc + jnp.dot(xr.reshape(rows, kr).astype(jnp.bfloat16),
                            s_ref[...], preferred_element_type=jnp.float32)

    # 5) ReLU (ReLU precedes BatchNorm in this architecture), packed bf16 store.
    y = jnp.maximum(acc, 0.0)
    y_ref[...] = y.reshape(nb, ho, nout).astype(y_ref.dtype)

    # 6) BatchNorm partial statistics: row0 = sum, row1 = sumsq (per packed lane).
    s = jnp.sum(y, axis=0).reshape(1, nout)
    sq = jnp.sum(y * y, axis=0).reshape(1, nout)
    stat_ref[...] = jnp.concatenate(
        [s, sq, jnp.zeros((6, nout), jnp.float32)], axis=0)


def fused_conv_relu_stats(x, a_in, b_in, w_toe, bias, stride,
                          residual=None, shortcut=None):
    """y = relu(conv3x3(x*a_in + b_in) + bias [+ shortcut]) with per-lane
    partial (sum, sumsq) of y emitted for the following BatchNorm.

    x:         (n, h, wd*cin) bf16 packed activations.
    a_in/b_in: (1, cin) fp32 affine of the *previous* BatchNorm (folded here).
    w_toe:     (3, wd*cin, wo*cout) bf16 Toeplitz weight slabs.
    bias:      (1, cout) fp32 conv bias.
    residual:  (r, ar, br) identity shortcut, r packed like the output.
    shortcut:  (xr, axr, bxr, smat) option-A downsample shortcut (in-kernel).
    """
    n, h, kin = x.shape
    cin = a_in.shape[-1]
    wd = kin // cin
    nout = w_toe.shape[-1]
    cout = bias.shape[-1]
    wo = nout // cout
    assert stride in (1, 2) and h % stride == 0 and wd % stride == 0
    assert w_toe.shape[1] == kin
    ho = h // stride

    # stride-2: pack adjacent input-row pairs into lanes with a FREE reshape so
    # the kernel only needs aligned lane slices (no strided indexing anywhere).
    x_k = x if stride == 1 else x.reshape(n, ho, 2 * kin)
    a_t = jnp.tile(a_in.astype(jnp.float32), (1, wd * stride))
    b_t = jnp.tile(b_in.astype(jnp.float32), (1, wd * stride))
    bias_t = jnp.tile(bias.astype(jnp.float32), (1, wo))

    # VMEM sizing: per-image bytes (double-buffered bf16 blocks + fp32 temps),
    # using the *output* spatial size for stride-2 layers.
    per_img = (2 * (h * kin + ho * nout) * 2          # x / y blocks (x2 buffers)
               + (h + 2) * kin * 2                    # padded bf16 copy
               + ho * nout * 4 + h * kin * 4)         # fp32 acc / folded input
    if residual is not None:
        per_img += 3 * ho * nout * 2
    if shortcut is not None:
        per_img += 3 * shortcut[0].shape[1] * shortcut[0].shape[2] * 2
    fixed = w_toe.size * 2 + (shortcut[3].size * 2 if shortcut is not None else 0)
    vlimit = _vmem_limit_bytes()
    budget = max(per_img, (vlimit - fixed - (2 << 20)) // 2)
    nb = _pick_nb(n, per_img, budget)
    grid = (n // nb,)

    res_mode = 0
    args = [x_k, a_t, b_t, w_toe, bias_t]
    in_specs = [
        pl.BlockSpec((nb, ho, kin * stride), lambda i: (i, 0, 0)),
        pl.BlockSpec((1, kin * stride), lambda i: (0, 0)),
        pl.BlockSpec((1, kin * stride), lambda i: (0, 0)),
        pl.BlockSpec((3, kin, nout), lambda i: (0, 0, 0)),
        pl.BlockSpec((1, nout), lambda i: (0, 0)),
    ]
    if residual is not None:
        res_mode = 1
        r, ar, br = residual
        assert r.shape == (n, ho, nout)
        args += [r, jnp.tile(ar.astype(jnp.float32), (1, wo)),
                 jnp.tile(br.astype(jnp.float32), (1, wo))]
        in_specs += [
            pl.BlockSpec((nb, ho, nout), lambda i: (i, 0, 0)),
            pl.BlockSpec((1, nout), lambda i: (0, 0)),
            pl.BlockSpec((1, nout), lambda i: (0, 0)),
        ]
    elif shortcut is not None:
        res_mode = 2
        xr, axr, bxr, smat = shortcut
        hr, kr = xr.shape[1], xr.shape[2]
        cr = axr.shape[-1]
        assert hr == 2 * ho and smat.shape == (kr, nout) and kr % cr == 0
        xr_k = xr.reshape(n, ho, 2 * kr)          # free reshape: row pairs -> lanes
        args += [xr_k, jnp.tile(axr.astype(jnp.float32), (1, kr // cr)),
                 jnp.tile(bxr.astype(jnp.float32), (1, kr // cr)), smat]
        in_specs += [
            pl.BlockSpec((nb, ho, 2 * kr), lambda i: (i, 0, 0)),
            pl.BlockSpec((1, kr), lambda i: (0, 0)),
            pl.BlockSpec((1, kr), lambda i: (0, 0)),
            pl.BlockSpec((kr, nout), lambda i: (0, 0)),
        ]

    out_shape = (
        jax.ShapeDtypeStruct((n, ho, nout), jnp.bfloat16),
        jax.ShapeDtypeStruct((grid[0] * 8, nout), jnp.float32),
    )
    out_specs = (
        pl.BlockSpec((nb, ho, nout), lambda i: (i, 0, 0)),
        pl.BlockSpec((8, nout), lambda i: (i, 0)),
    )

    kernel = functools.partial(_fused_conv_kernel, stride=stride,
                               res_mode=res_mode)
    y, stats = pl.pallas_call(
        kernel,
        grid=grid,
        in_specs=in_specs,
        out_specs=out_specs,
        out_shape=out_shape,
        compiler_params=pltpu.CompilerParams(
            dimension_semantics=("parallel",),
            vmem_limit_bytes=vlimit),
    )(*args)
    return y, stats


# ---------------------------------------------------------------------------
# BatchNorm (train-mode batch statistics) -> per-channel affine (tiny JAX glue)
# ---------------------------------------------------------------------------
def _bn_affine(stats, gamma, beta, count, wo):
    c = gamma.shape[-1]
    st = stats.reshape(-1, 8, wo, c)
    total = jnp.sum(st[:, 0], axis=(0, 1))
    total_sq = jnp.sum(st[:, 1], axis=(0, 1))
    mean = total / count
    var = jnp.maximum(total_sq / count - mean * mean, 0.0)   # biased (BN train)
    inv = jax.lax.rsqrt(var + _EPS)
    a = gamma.reshape(-1) * inv
    b = beta.reshape(-1) - mean * a
    return a.reshape(1, c), b.reshape(1, c)


# ---------------------------------------------------------------------------
# Tail: final BN affine + softmax flex-pool + Linear, fused into one matmul
# ---------------------------------------------------------------------------
def _tail_kernel(y_ref, a_ref, c_ref, o_ref):
    nb, h3, _ = y_ref.shape
    k = o_ref.shape[-1]
    y = y_ref[...]
    amat = a_ref[...]
    acc = jnp.zeros((nb, k), jnp.float32) + c_ref[...]
    for hh in range(h3):
        acc = acc + jnp.dot(y[:, hh, :], amat[hh],
                            preferred_element_type=jnp.float32)
    o_ref[...] = acc


def flex_pool_linear(y, a, b, fp, w_lin, b_lin):
    n, h3, nout = y.shape
    c = fp.shape[0]
    w3 = nout // c
    k = w_lin.shape[-1]
    assert fp.shape[1] == h3 and fp.shape[2] == w3

    # Parameter-sized glue: fold BN affine (a, b), the softmax pooling weights
    # and the Linear weight into one (h3, w3*c, k) matrix + (1, k) offset.
    sm = jax.nn.softmax(fp.reshape(c, -1).astype(jnp.float32), axis=1)
    sm_p = sm.reshape(c, h3, w3).transpose(1, 2, 0).reshape(h3, nout)
    a_t = jnp.tile(a.reshape(1, c), (1, w3)).reshape(nout)
    b_t = jnp.tile(b.reshape(1, c), (1, w3)).reshape(nout)
    w_exp = jnp.tile(w_lin, (w3, 1))                           # (nout, k)
    amat = ((sm_p * a_t[None, :])[:, :, None]
            * w_exp[None, :, :]).astype(jnp.bfloat16)          # (h3, nout, k)
    cvec = (b_lin.reshape(1, k)
            + (jnp.sum(sm_p, axis=0) * b_t)[None, :] @ w_exp).astype(jnp.float32)

    nbt = _pick_tail_nb(n)
    grid = (n // nbt,)
    return pl.pallas_call(
        _tail_kernel,
        grid=grid,
        in_specs=[pl.BlockSpec((nbt, h3, nout), lambda i: (i, 0, 0)),
                  pl.BlockSpec((h3, nout, k), lambda i: (0, 0, 0)),
                  pl.BlockSpec((1, k), lambda i: (0, 0))],
        out_specs=pl.BlockSpec((nbt, k), lambda i: (i, 0)),
        out_shape=jax.ShapeDtypeStruct((n, k), jnp.float32),
        compiler_params=pltpu.CompilerParams(
            dimension_semantics=("parallel",),
            vmem_limit_bytes=_vmem_limit_bytes()),
    )(y, amat, cvec)


# ---------------------------------------------------------------------------
# Network orchestration
# ---------------------------------------------------------------------------
def _basic_block(y_in, a_in, b_in, p):
    stride = p["stride"]
    cin = a_in.shape[-1]
    cout = p["b1"].shape[-1]

    # conv1 (previous BN folded into its input read) -> ReLU -> BN1 statistics.
    y1, st1 = fused_conv_relu_stats(y_in, a_in, b_in, p["w1"], p["b1"], stride)
    n, h1, nout = y1.shape
    wo = nout // cout
    a1, b1 = _bn_affine(st1, p["g1"], p["be1"], n * h1 * wo, wo)

    # Reference BasicBlock: out = conv2(bn1(relu(conv1(x)))) + shortcut(x);
    # result = bn2(relu(out)).  (ReLU before BN, shortcut added before BN2.)
    if stride == 1 and cin == cout:
        residual, shortcut = (y_in, a_in, b_in), None
    else:
        residual, shortcut = None, (y_in, a_in, b_in, p["smat"])

    y2, st2 = fused_conv_relu_stats(y1, a1, b1, p["w2"], p["b2"], 1,
                                    residual=residual, shortcut=shortcut)
    a2, b2 = _bn_affine(st2, p["g2"], p["be2"], n * h1 * wo, wo)
    return y2, a2, b2


def resnet_forward(params, x_nchw):
    x = jnp.transpose(x_nchw, (0, 2, 3, 1))                    # NCHW -> NHWC
    n, h, wd, c = x.shape
    cin_pad = params["cin_pad"]
    if cin_pad != c:
        x = jnp.pad(x, ((0, 0), (0, 0), (0, 0), (0, cin_pad - c)))
    xp = x.reshape(n, h, wd * cin_pad).astype(jnp.bfloat16)    # lane-dense packing
    one = jnp.ones((1, cin_pad), jnp.float32)
    zero = jnp.zeros((1, cin_pad), jnp.float32)

    y, st = fused_conv_relu_stats(xp, one, zero,
                                  params["conv1_w"], params["conv1_b"], 1)
    cout = params["conv1_b"].shape[-1]
    wo = y.shape[-1] // cout
    a, b = _bn_affine(st, params["bn1_g"], params["bn1_b"],
                      n * y.shape[1] * wo, wo)

    for layer in params["layers"]:
        for blk in layer:
            y, a, b = _basic_block(y, a, b, blk)

    return flex_pool_linear(y, a, b, params["flex_pool"],
                            params["lin_w"], params["lin_b"])


# ---------------------------------------------------------------------------
# Deterministic parameter initialization (mirrors __init__ + _weights_init)
# ---------------------------------------------------------------------------
def _kaiming(key, shape, fan_in):
    return jax.random.normal(key, shape, jnp.float32) * jnp.sqrt(2.0 / fan_in)


def _toeplitz_weights(w_np, wd, stride):
    """(3,3,cin,cout) conv weights -> (3, wd*cin, wo*cout) slabs implementing
    the W shift / stride / zero W-padding as a matmul in the packed layout."""
    cin, cout = w_np.shape[2], w_np.shape[3]
    wo = wd // stride
    out = np.zeros((3, wd * cin, wo * cout), np.float32)
    for kh in range(3):
        for kw in range(3):
            for ow in range(wo):
                iw = ow * stride + kw - 1
                if 0 <= iw < wd:
                    out[kh, iw * cin:(iw + 1) * cin,
                        ow * cout:(ow + 1) * cout] = w_np[kh, kw]
    return jnp.asarray(out, jnp.bfloat16)


def _shortcut_matrix(wd_in, cin, cout):
    """Option-A shortcut (W subsample ::2 + channel zero-pad) as a 0/1 matrix."""
    wo = wd_in // 2
    padc = cout // 4
    s = np.zeros((wd_in * cin, wo * cout), np.float32)
    eye = np.eye(cin, dtype=np.float32)
    for ow in range(wo):
        iw = 2 * ow
        s[iw * cin:(iw + 1) * cin,
          ow * cout + padc:ow * cout + padc + cin] = eye
    return jnp.asarray(s, jnp.bfloat16)


def _conv_params(key, cin, cout, wd, stride, cin_pad=None):
    cin_pad = cin if cin_pad is None else cin_pad
    kw_, kb_ = jax.random.split(key)
    fan_in = cin * 9
    w = _kaiming(kw_, (3, 3, cin, cout), fan_in)
    if cin_pad != cin:          # zero rows for padded (unused) input channels
        w = jnp.concatenate(
            [w, jnp.zeros((3, 3, cin_pad - cin, cout), jnp.float32)], axis=2)
    w_toe = _toeplitz_weights(np.asarray(w), wd, stride)
    bound = 1.0 / float(np.sqrt(fan_in))
    bias = jax.random.uniform(kb_, (1, cout), jnp.float32, -bound, bound)
    return w_toe, bias


def _block_params(key, cin, cout, stride, wd_in):
    k1, k2 = jax.random.split(key)
    wo = wd_in // stride
    w1, b1 = _conv_params(k1, cin, cout, wd_in, stride)
    w2, b2 = _conv_params(k2, cout, cout, wo, 1)
    p = dict(stride=stride, w1=w1, b1=b1,
             g1=jnp.ones((1, cout), jnp.float32),
             be1=jnp.zeros((1, cout), jnp.float32),
             w2=w2, b2=b2,
             g2=jnp.ones((1, cout), jnp.float32),
             be2=jnp.zeros((1, cout), jnp.float32))
    if stride != 1 or cin != cout:
        p["smat"] = _shortcut_matrix(wd_in, cin, cout)
    return p, wo


def init_resnet(key, in_shape, in_dims, num_blocks, num_classes):
    keys = jax.random.split(key, 2 + sum(num_blocks))
    ki = iter(keys)
    params = {}
    cin_pad = max(8, ((in_dims + 7) // 8) * 8)       # lane-friendly stem width
    params["cin_pad"] = cin_pad
    params["conv1_w"], params["conv1_b"] = _conv_params(
        next(ki), in_dims, 16, in_shape, 1, cin_pad)
    params["bn1_g"] = jnp.ones((1, 16), jnp.float32)
    params["bn1_b"] = jnp.zeros((1, 16), jnp.float32)

    layers = []
    cin, wd = 16, in_shape
    for out_dims, nbk, stride0 in zip((16, 32, 64), num_blocks, (1, 2, 2)):
        blocks = []
        for s in [stride0] + [1] * (nbk - 1):
            blk, wd = _block_params(next(ki), cin, out_dims, s, wd)
            blocks.append(blk)
            cin = out_dims
        layers.append(blocks)
    params["layers"] = layers

    s3 = ceil(in_shape / 4)
    params["flex_pool"] = jnp.ones((64, s3, s3), jnp.float32) / float(s3 ** 2)

    klw, klb = jax.random.split(next(ki))
    params["lin_w"] = _kaiming(klw, (num_classes, 64), 64).T   # (64, K)
    bound = 1.0 / float(np.sqrt(64.0))
    params["lin_b"] = jax.random.uniform(klb, (1, num_classes), jnp.float32,
                                         -bound, bound)
    return params


if __name__ == "__main__":
    key = jax.random.PRNGKey(0)
    kp, kx = jax.random.split(key)

    in_shape, in_dims, num_blocks, num_classes = 16, 3, [1, 1, 1], 10
    params = init_resnet(kp, in_shape, in_dims, num_blocks, num_classes)

    x = jax.random.normal(kx, (2, in_dims, in_shape, in_shape), jnp.float32)  # NCHW
    logits = resnet_forward(params, x)
    jax.block_until_ready(logits)
    assert logits.shape == (2, num_classes), logits.shape
    assert bool(jnp.all(jnp.isfinite(logits)))
    print("KERNEL_OK")
</pallas_src>

<mosaic_0001>
module attributes {stable_mosaic.version = 11 : i64} {
  func.func @_fused_conv_kernel(%arg0: i32, %arg1: memref<1x16x128xbf16, #tpu.memory_space<vmem>>, %arg2: memref<1x128xf32, #tpu.memory_space<vmem>>, %arg3: memref<1x128xf32, #tpu.memory_space<vmem>>, %arg4: memref<3x128x256xbf16, #tpu.memory_space<vmem>>, %arg5: memref<1x256xf32, #tpu.memory_space<vmem>>, %arg6: memref<1x16x256xbf16, #tpu.memory_space<vmem>>, %arg7: memref<8x256xf32, #tpu.memory_space<vmem>>) attributes {dimension_semantics = [#tpu.dimension_semantics<parallel>], iteration_bounds = array<i64: 2>, scalar_prefetch = 0 : i64, scratch_operands = 0 : i64, tpu.core_type = #tpu.core_type<tc>, window_params = [{transform_indices = @transform_0, window_bounds = array<i64: 1, 16, 128>}, {pipeline_mode = #tpu.pipeline_mode<synchronous>, transform_indices = @transform_1, window_bounds = array<i64: 1, 128>}, {pipeline_mode = #tpu.pipeline_mode<synchronous>, transform_indices = @transform_2, window_bounds = array<i64: 1, 128>}, {pipeline_mode = #tpu.pipeline_mode<synchronous>, transform_indices = @transform_3, window_bounds = array<i64: 3, 128, 256>}, {pipeline_mode = #tpu.pipeline_mode<synchronous>, transform_indices = @transform_4, window_bounds = array<i64: 1, 256>}, {transform_indices = @transform_5, window_bounds = array<i64: 1, 16, 256>}, {transform_indices = @transform_6, window_bounds = array<i64: 8, 256>}]} {
    %c0 = arith.constant 0 : index
    %c0_0 = arith.constant 0 : index
    %c0_1 = arith.constant 0 : index
    %0 = vector.load %arg1[%c0, %c0_0, %c0_1] : memref<1x16x128xbf16, #tpu.memory_space<vmem>>, vector<1x16x128xbf16>
    %1 = arith.extf %0 : vector<1x16x128xbf16> to vector<1x16x128xf32>
    %c0_2 = arith.constant 0 : index
    %c0_3 = arith.constant 0 : index
    %2 = vector.load %arg2[%c0_2, %c0_3] : memref<1x128xf32, #tpu.memory_space<vmem>>, vector<1x128xf32>
    %3 = vector.shape_cast %2 : vector<1x128xf32> to vector<1x1x128xf32>
    %4 = vector.broadcast %3 : vector<1x1x128xf32> to vector<1x16x128xf32>
    %5 = arith.mulf %1, %4 : vector<1x16x128xf32>
    %c0_4 = arith.constant 0 : index
    %c0_5 = arith.constant 0 : index
    %6 = vector.load %arg3[%c0_4, %c0_5] : memref<1x128xf32, #tpu.memory_space<vmem>>, vector<1x128xf32>
    %7 = vector.shape_cast %6 : vector<1x128xf32> to vector<1x1x128xf32>
    %8 = vector.broadcast %7 : vector<1x1x128xf32> to vector<1x16x128xf32>
    %9 = arith.addf %5, %8 : vector<1x16x128xf32>
    %10 = arith.truncf %9 : vector<1x16x128xf32> to vector<1x16x128xbf16>
    %cst = arith.constant 0.000000e+00 : bf16
    %11 = vector.broadcast %cst : bf16 to vector<1x1x128xbf16>
    %12 = tpu.concatenate %11, %10, %11 in 1 : vector<1x1x128xbf16>, vector<1x16x128xbf16>, vector<1x1x128xbf16> -> vector<1x18x128xbf16>
    %13 = vector.extract_strided_slice %12 {offsets = [0, 0, 0], sizes = [1, 16, 128], strides = [1, 1, 1]} : vector<1x18x128xbf16> to vector<1x16x128xbf16>
    %14 = vector.extract_strided_slice %12 {offsets = [0, 1, 0], sizes = [1, 16, 128], strides = [1, 1, 1]} : vector<1x18x128xbf16> to vector<1x16x128xbf16>
    %15 = vector.extract_strided_slice %12 {offsets = [0, 2, 0], sizes = [1, 16, 128], strides = [1, 1, 1]} : vector<1x18x128xbf16> to vector<1x16x128xbf16>
    %c0_6 = arith.constant 0 : index
    %c0_7 = arith.constant 0 : index
    %c0_8 = arith.constant 0 : index
    %16 = vector.load %arg4[%c0_6, %c0_7, %c0_8] : memref<3x128x256xbf16, #tpu.memory_space<vmem>>, vector<3x128x256xbf16>
    %cst_9 = arith.constant 0.000000e+00 : f32
    %17 = vector.broadcast %cst_9 : f32 to vector<16x256xf32>
    %c0_10 = arith.constant 0 : index
    %c0_11 = arith.constant 0 : index
    %18 = vector.load %arg5[%c0_10, %c0_11] : memref<1x256xf32, #tpu.memory_space<vmem>>, vector<1x256xf32>
    %19 = vector.broadcast %18 : vector<1x256xf32> to vector<16x256xf32>
    %20 = arith.addf %17, %19 : vector<16x256xf32>
    %21 = vector.shape_cast %13 : vector<1x16x128xbf16> to vector<16x128xbf16>
    %22 = vector.extract_strided_slice %16 {offsets = [0, 0, 0], sizes = [1, 128, 256], strides = [1, 1, 1]} : vector<3x128x256xbf16> to vector<1x128x256xbf16>
    %23 = vector.shape_cast %22 : vector<1x128x256xbf16> to vector<128x256xbf16>
    %cst_12 = arith.constant dense<0.000000e+00> : vector<16x256xf32>
    %24 = tpu.matmul %21, %23, %cst_12 {dimension_numbers = #tpu.dot_dimension_numbers<[1], [0], [0], [1], [0, 0, 1, 1], [], []>} : vector<16x128xbf16>, vector<128x256xbf16>, vector<16x256xf32> -> vector<16x256xf32>
    %25 = arith.addf %20, %24 : vector<16x256xf32>
    %26 = vector.shape_cast %14 : vector<1x16x128xbf16> to vector<16x128xbf16>
    %27 = vector.extract_strided_slice %16 {offsets = [1, 0, 0], sizes = [1, 128, 256], strides = [1, 1, 1]} : vector<3x128x256xbf16> to vector<1x128x256xbf16>
    %28 = vector.shape_cast %27 : vector<1x128x256xbf16> to vector<128x256xbf16>
    %cst_13 = arith.constant dense<0.000000e+00> : vector<16x256xf32>
    %29 = tpu.matmul %26, %28, %cst_13 {dimension_numbers = #tpu.dot_dimension_numbers<[1], [0], [0], [1], [0, 0, 1, 1], [], []>} : vector<16x128xbf16>, vector<128x256xbf16>, vector<16x256xf32> -> vector<16x256xf32>
    %30 = arith.addf %25, %29 : vector<16x256xf32>
    %31 = vector.shape_cast %15 : vector<1x16x128xbf16> to vector<16x128xbf16>
    %32 = vector.extract_strided_slice %16 {offsets = [2, 0, 0], sizes = [1, 128, 256], strides = [1, 1, 1]} : vector<3x128x256xbf16> to vector<1x128x256xbf16>
    %33 = vector.shape_cast %32 : vector<1x128x256xbf16> to vector<128x256xbf16>
    %cst_14 = arith.constant dense<0.000000e+00> : vector<16x256xf32>
    %34 = tpu.matmul %31, %33, %cst_14 {dimension_numbers = #tpu.dot_dimension_numbers<[1], [0], [0], [1], [0, 0, 1, 1], [], []>} : vector<16x128xbf16>, vector<128x256xbf16>, vector<16x256xf32> -> vector<16x256xf32>
    %35 = arith.addf %30, %34 : vector<16x256xf32>
    %cst_15 = arith.constant 0.000000e+00 : f32
    %36 = vector.broadcast %cst_15 : f32 to vector<16x256xf32>
    %37 = arith.maximumf %35, %36 : vector<16x256xf32>
    %38 = vector.shape_cast %37 : vector<16x256xf32> to vector<1x16x256xf32>
    %39 = arith.truncf %38 : vector<1x16x256xf32> to vector<1x16x256xbf16>
    %c0_16 = arith.constant 0 : index
    %c0_17 = arith.constant 0 : index
    %c0_18 = arith.constant 0 : index
    %40 = vector.load %arg6[%c0_16, %c0_17, %c0_18] : memref<1x16x256xbf16, #tpu.memory_space<vmem>>, vector<1x16x256xbf16>
    tpu.vector_store %arg6[%c0_16, %c0_17, %c0_18], %39 {strides = array<i32>} : memref<1x16x256xbf16, #tpu.memory_space<vmem>>, vector<1x16x256xbf16>,
    %cst_19 = arith.constant dense<0.000000e+00> : vector<256xf32>
    %41 = vector.multi_reduction <add>, %37, %cst_19 [0] : vector<16x256xf32> to vector<256xf32>
    %42 = vector.shape_cast %41 : vector<256xf32> to vector<1x256xf32>
    %43 = arith.mulf %37, %37 : vector<16x256xf32>
    %cst_20 = arith.constant dense<0.000000e+00> : vector<256xf32>
    %44 = vector.multi_reduction <add>, %43, %cst_20 [0] : vector<16x256xf32> to vector<256xf32>
    %45 = vector.shape_cast %44 : vector<256xf32> to vector<1x256xf32>
    %cst_21 = arith.constant 0.000000e+00 : f32
    %46 = vector.broadcast %cst_21 : f32 to vector<6x256xf32>
    %47 = tpu.concatenate %42, %45, %46 in 0 : vector<1x256xf32>, vector<1x256xf32>, vector<6x256xf32> -> vector<8x256xf32>
    %c0_22 = arith.constant 0 : index
    %c0_23 = arith.constant 0 : index
    %48 = vector.load %arg7[%c0_22, %c0_23] : memref<8x256xf32, #tpu.memory_space<vmem>>, vector<8x256xf32>
    tpu.vector_store %arg7[%c0_22, %c0_23], %47 {strides = array<i32>} : memref<8x256xf32, #tpu.memory_space<vmem>>, vector<8x256xf32>,
    return
  }
  func.func @transform_0(%arg0: i32) -> (i32, i32, i32) {
    %c0_i32 = arith.constant 0 : i32
    %c0_i32_0 = arith.constant 0 : i32
    %c0_i32_1 = arith.constant 0 : i32
    return %arg0, %c0_i32, %c0_i32_0 : i32, i32, i32
  }
  func.func @transform_1(%arg0: i32) -> (i32, i32) {
    %c0_i32 = arith.constant 0 : i32
    %c0_i32_0 = arith.constant 0 : i32
    %c0_i32_1 = arith.constant 0 : i32
    return %c0_i32, %c0_i32_0 : i32, i32
  }
  func.func @transform_2(%arg0: i32) -> (i32, i32) {
    %c0_i32 = arith.constant 0 : i32
    %c0_i32_0 = arith.constant 0 : i32
    %c0_i32_1 = arith.constant 0 : i32
    return %c0_i32, %c0_i32_0 : i32, i32
  }
  func.func @transform_3(%arg0: i32) -> (i32, i32, i32) {
    %c0_i32 = arith.constant 0 : i32
    %c0_i32_0 = arith.constant 0 : i32
    %c0_i32_1 = arith.constant 0 : i32
    %c0_i32_2 = arith.constant 0 : i32
    return %c0_i32, %c0_i32_0, %c0_i32_1 : i32, i32, i32
  }
  func.func @transform_4(%arg0: i32) -> (i32, i32) {
    %c0_i32 = arith.constant 0 : i32
    %c0_i32_0 = arith.constant 0 : i32
    %c0_i32_1 = arith.constant 0 : i32
    return %c0_i32, %c0_i32_0 : i32, i32
  }
  func.func @transform_5(%arg0: i32) -> (i32, i32, i32) {
    %c0_i32 = arith.constant 0 : i32
    %c0_i32_0 = arith.constant 0 : i32
    %c0_i32_1 = arith.constant 0 : i32
    return %arg0, %c0_i32, %c0_i32_0 : i32, i32, i32
  }
  func.func @transform_6(%arg0: i32) -> (i32, i32) {
    %c0_i32 = arith.constant 0 : i32
    %c0_i32_0 = arith.constant 0 : i32
    return %arg0, %c0_i32 : i32, i32
  }
}

</mosaic_0001>

<bundles_post_ra>
// kernel: tpu_custom_call.1
= control target key start
LH: loop header
LB: loop body
LE: loop exit
PB: predicated region body
PF: predicated region fallthrough
CT: control target
= control target key end

     0   :  { %12 = vsyncpa [#allocation3], 0  ;;  %s1707_s0 = inlined_call_operand.hbm [shape: bf16[2,16,128], index: 0, kind: input, shape index: {}]   ;;  %s1708_s1 = inlined_call_operand.vmem [shape: f32[1,128], index: 1, kind: input, shape index: {}]   ;;  %s1709_s2 = inlined_call_operand.vmem [shape: f32[1,128], index: 2, kind: input, shape index: {}]   ;;  %s1710_s3 = inlined_call_operand.hbm [shape: bf16[3,128,256], index: 3, kind: input, shape index: {}]   ;;  %s1711_s4 = inlined_call_operand.vmem [shape: f32[1,256], index: 4, kind: input, shape index: {}]   ;;  %s1712_s5 = inlined_call_operand.hbm [shape: bf16[2,16,256], index: 5, kind: output, shape index: {0}]   ;;  %s1713_s6 = inlined_call_operand.hbm [shape: f32[16,256], index: 6, kind: output, shape index: {1}]  }
   0x1   :  { %14 = vsyncpa [#allocation3 + $0x1], 0 }
   0x2   :  { %15 = vsyncpa [#allocation6], 0 }
   0x3   :  { %16 = vsyncpa [#allocation4], 0 }
   0x4   :  { %18 = vsyncpa [#allocation4 + $0x1], 0 }
   0x5   :  { %19 = vsyncpa [#allocation9], 0 }
   0x6   :  { %21 = vsyncpa [#allocation9 + $0x1], 0  ;;  %s1446_s21 = smov 0   ;;  %s1448_s22 = smov 0  }
   0x7   :  { %s1450_s23 = smov 0   ;;  %s1452_s24 = smov 0  }
   0x8 LB: > { %s1467_s25 = sadd.s32 4294967295, %s1398_s24   ;;  %s1004_s26 = sadd.s32 4294967294, %s1398_s24   ;;  %s1398_s24 = sphi %s1452_s24, %s1733_s24   ;;  %s1394_s23 = sphi %s1450_s23, %s1732_s23   ;;  %s1390_s22 = sphi %s1448_s22, %s1731_s22   ;;  %s1386_s21 = sphi %s1446_s21, %s1730_s21  }
   0x9   : > { %p47_p0 = scmp.ne.s32.totalorder %s1390_s22, %s1386_s21  ;;  %p1714_p1 = scmp.eq.s32.totalorder %s1467_s25, 0 }
   0xa   : > { %p161_p3 = scmp.eq.s32.totalorder %s1004_s26, 1  ;;  %p1005_p5 = scmp.ge.s32.totalorder %s1398_s24, 1 }
   0xb   : > { %p1476_p4 = por %p1714_p1, %p47_p0  ;;  %p194_p7 = scmp.lt.s32.totalorder %s1398_s24, 3 }
   0xc   : > { %p1481_p6 = por %p161_p3, %p47_p0  ;;  %s1400_s30 = smov [#allocation5]  }
   0xd   : > { %s1717_s27 = scalar_select %p1476_p4, 1, 0 }
   0xe   : > { %s1718_s28 = scalar_select %p1481_p6, 1, 0 }
   0xf   : > { %p1486_p8 = pnand %p1005_p5, %p194_p7  ;;  %s212_s7 = sshll.u32 %s1400_s30, 4  ;;  %s1490_s7 = int_to_ptr.vmem [resolvable:$true] %s212_s7 }
  0x10   : > { %s1502_s9 = sadd.s32 1, %s1398_s24   ;;  %s34_s10 = sadd.s32 1, %s1394_s23 }
  0x11   : > { %s1719_s29 = scalar_select %p1486_p8, 1, 0 }
  0x12   : > { %p1107_p9 = pneg %p1486_p8  ;;  %s31_s11 = ssub.s32 %s1398_s24, %s1502_s9 }
  0x13   : > { %s1238_s14 = scalar_lea.hbm %s1710_s3, 6144 }
  0x14   : > { %p1497_p11 = pnand %p1107_p9, %p1714_p1  ;;  %p1239_p12 = scmp.ne.s32.totalorder %s1710_s3, %s1238_s14 }
  0x15   : > { %p1245_p5 = scmp.lt.u32.totalorder %s1238_s14, %s1710_s3 }
  0x16   : > { %p1240_p13 = pneg %p1497_p11 }
  0x18   : > { %p1241_p0 = pnand %p1240_p13, %p1239_p12 }
  0x1a   : > { %p1242_p3 = pneg %p1241_p0 }
  0x1c   : > { %p1247_p7 = pnand %p1245_p5, %p1242_p3 }
  0x1e   : > { %1250 = shalt.err (!%p1247_p7)
}
  0x1f   : > { %s1251_s19 = scalar_lea.vmem %s1490_s7, 6144  ;;  %p1259_p2 = scmp.lt.s32.totalorder %s1490_s7, %s1490_s7 }
  0x20   : > { %p1252_p9 = scmp.ne.s32.totalorder %s1490_s7, %s1251_s19  ;;  %p1260_p6 = scmp.lt.s32.totalorder %s1251_s19, %s1251_s19 }
  0x22   : > { %p1254_p10 = pnand %p1252_p9, %p1240_p13  ;;  %p1261_p4 = por %p1260_p6, %p1259_p2 }
  0x24   : > { %p1255_p1 = pneg %p1254_p10 }
  0x26   : > { %p1262_p8 = pnand %p1261_p4, %p1255_p1 }
  0x28   : > { %1265 = shalt.err (!%p1262_p8)
}
  0x29   : > { %s1401_s20 = smov 128   ;;  %s1402_s26 = smov 8  }
  0x2a   : > { %1110 = dma.hbm_to_vmem [thread:$0]  (!%p1497_p11), %s1710_s3, 6144, %s1490_s7, [#allocation6], %s1401_s20, %s1401_s20, %s1402_s26  }
  0x2b   : > { %p32_p2 = scmp.eq.s32.totalorder %s31_s11, 0  ;;  %p41_p1 = scmp.ne.s32.totalorder %s1394_s23, %s1390_s22 }
  0x2c   : > { %p42_p4 = scmp.eq.s32.totalorder %s1398_s24, 0  ;;  %p1123_p6 = scmp.lt.s32.totalorder %s1398_s24, 2 }
  0x2d   : > { %s1533_s13 = scalar_select %p32_p2, %s1394_s23, %s34_s10  }
  0x2e   : > { %p43_p8 = por %p42_p4, %p41_p1  ;;  %p1721_p10 = scmp.eq.s32.totalorder %s1467_s25, 1 }
  0x2f   : > { %s229_s15 = sand.u32 1, %s1394_s23   ;;  %s1076_s16 = sshll.u32 %s1398_s24, 7 }
  0x30   : > { %p1537_p12 = por %p1721_p10, %p41_p1  ;;  %s1008_s17 = sshll.u32 %s229_s15, 3 }
  0x31   : > { %s1546_s19 = scalar_lea.hbm %s1707_s0, %s1076_s16  ;;  %s233_s7 = scalar_lea.vmem [#allocation2], %s1008_s17 }
  0x32   : > { %s240_s10 = sshll.u32 %s233_s7, 4  ;;  %p1548_p11 = pnand %p1123_p6, %p43_p8  ;;  %s1552_s10 = int_to_ptr.vmem [resolvable:$true] %s240_s10 }
  0x33   : > { %s1554_s20 = scalar_lea.sflag [#allocation3], %s229_s15  ;;  %s1266_s26 = scalar_lea.hbm %s1546_s19, 128 }
  0x34   : > { %p1267_p13 = scmp.ne.s32.totalorder %s1546_s19, %s1266_s26  ;;  %p1268_p0 = pneg %p1548_p11 }
  0x35   : > { %s1271_s16 = scalar_lea.hbm %s1707_s0, 256  ;;  %p1272_p7 = scmp.lt.u32.totalorder %s1546_s19, %s1707_s0 }
  0x36   : > { %p1269_p3 = pnand %p1268_p0, %p1267_p13  ;;  %p1273_p9 = scmp.lt.u32.totalorder %s1271_s16, %s1266_s26 }
  0x37   : > { %p1275_p1 = scmp.lt.u32.totalorder %s1266_s26, %s1546_s19 }
  0x38   : > { %p1270_p5 = pneg %p1269_p3  ;;  %p1274_p2 = por %p1273_p9, %p1272_p7 }
  0x3a   : > { %p1276_p4 = por %p1275_p1, %p1274_p2 }
  0x3c   : > { %p1277_p6 = pnand %p1276_p4, %p1270_p5 }
  0x3e   : > { %1280 = shalt.err (!%p1277_p6)
}
  0x3f   : > { %s1281_s15 = scalar_lea.vmem %s1552_s10, 128  ;;  %s1403_s18 = smov [#allocation2]  }
  0x40   : > { %p1282_p8 = scmp.ne.s32.totalorder %s1552_s10, %s1281_s15  ;;  %s1286_s7 = sshll.u32 %s1403_s18, 4  ;;  %s1287_s7 = int_to_ptr.vmem [resolvable:$false] %s1286_s7 }
  0x41   : > { %s1288_s30 = scalar_lea.vmem %s1287_s7, 256  ;;  %p1289_p3 = scmp.lt.s32.totalorder %s1552_s10, %s1287_s7 }
  0x42   : > { %p1284_p10 = pnand %p1282_p8, %p1268_p0  ;;  %p1290_p7 = scmp.lt.s32.totalorder %s1288_s30, %s1281_s15 }
  0x44   : > { %p1285_p13 = pneg %p1284_p10  ;;  %p1291_p9 = por %p1290_p7, %p1289_p3 }
  0x46   : > { %p1292_p2 = pnand %p1291_p9, %p1285_p13 }
  0x48   : > { %1295 = shalt.err (!%p1292_p2)
}
  0x49   : > { %s1404_s26 = smov 64   ;;  %s1405_s12 = smov 4  }
  0x4a   : > { %1114 = dma.hbm_to_vmem [thread:$0]  (!%p1548_p11), %s1546_s19, 128, %s1552_s10, %s1554_s20, %s1404_s26, %s1404_s26, %s1405_s12  }
  0x4b   : > { %p1724_p0 = scmp.ne.s32.totalorder %s1719_s29, 0 }
  0x4c   : > { %s1585_s16 = sand.u32 (!%p1724_p0), 1, %s1390_s22   ;;  %p1725_p5 = scmp.ne.s32.totalorder (!%p1724_p0), %s1717_s27, 0 }
  0x4d   : > { %252 = sbr.rel (%p1724_p0) target bundleno = 417 (0x1a1), region = 40  ;;  %s1012_s17 = sshll.u32 (!%p1724_p0), %s1585_s16, 3 }
  0x4e   : > { %s255_s8 = scalar_lea.sflag (!%p1724_p0), [#allocation3], %s1585_s16  ;;  %s1589_s15 = scalar_lea.vmem (!%p1724_p0), [#allocation2], %s1012_s17 }
  0x54   : > { %1369 = dma.done.wait (%p1725_p5), %s255_s8, 128  }
  0x55   : > { %1371 = vsyncadd (%p1725_p5), %s255_s8, 4294967168  ;;  %p1726_p11 = scmp.eq.s32.totalorder %s1467_s25, 0 }
  0x57   : > { %1373 = dma.done.wait (%p1726_p11), [#allocation6], 6144   ;;  %p1727_p1 = pmov %p1726_p11 }
  0x58   : > { %v1406_v0 = vmov 0   ;;  %v1166_v1 = vld [vmem:[#allocation5 + $0x84] ss:$8 sps:$4 sm:$0xff]   ;;  %v1168_v2 = vld [vmem:[#allocation5 + $0x80] ss:$8 sps:$4 sm:$0xff]   ;;  %v1082_v15 = vld [vmem:[%s1589_s15] sm:$0xff]  }
  0x59   : > { %1375 = vsyncadd (%p1727_p1), [#allocation6], 4294961152  ;;  %649 = vmatprep.mubr.bf16.mxu0 %v1406_v0  ;;  %508 = vmatprep.mubr.bf16.mxu1 %v1406_v0  ;;  %v1169_v3 = vld [vmem:[#allocation5 + $0x94] ss:$8 sps:$4 sm:$0xff]   ;;  %v1171_v4 = vld [vmem:[#allocation5 + $0x90] ss:$8 sps:$4 sm:$0xff]   ;;  %v1083_v17 = vunpack.c.l.bf16 %v1082_v15  ;;  %v1084_v18 = vunpack.c.h.bf16 %v1082_v15  ;;  %v384_v15 = vlaneseq }
  0x5a   : > { %617 = vmatprep.subr.bf16.mxu0 %v1166_v1  ;;  %v1172_v5 = vld [vmem:[#allocation5 + $0xa4] ss:$8 sps:$4 sm:$0xff]   ;;  %v1174_v6 = vld [vmem:[#allocation5 + $0xa0] ss:$8 sps:$4 sm:$0xff]   ;;  %v1175_v7 = vld [vmem:[#allocation5 + $0xb4] ss:$8 sps:$4 sm:$0xff]  }
  0x5b   : > { %618 = vmatpush1.bf16.msra.mxu0 %v1168_v2  ;;  %v1187_v8 = vld [vmem:[#allocation5 + $0x4] ss:$8 sps:$4 sm:$0xff]   ;;  %v1189_v9 = vld [vmem:[#allocation5] ss:$8 sps:$4 sm:$0xff]   ;;  %v1177_v10 = vld [vmem:[#allocation5 + $0xb0] ss:$8 sps:$4 sm:$0xff]  }
  0x5c   : > { %619 = vmatprep.subr.bf16.mxu0 %v1169_v3  ;;  %v1178_v11 = vld [vmem:[#allocation5 + $0xc4] ss:$8 sps:$4 sm:$0xff]   ;;  %476 = vmatprep.subr.bf16.mxu1 %v1187_v8  ;;  %v1193_v12 = vld [vmem:[#allocation5 + $0x14] ss:$8 sps:$4 sm:$0xff]   ;;  %v1195_v13 = vld [vmem:[#allocation5 + $0x10] ss:$8 sps:$4 sm:$0xff]  }
  0x5d   : > { %477 = vmatpush1.bf16.msra.mxu1 %v1189_v9  ;;  %v1180_v14 = vld [vmem:[#allocation5 + $0xc0] ss:$8 sps:$4 sm:$0xff]   ;;  %v1181_v16 = vld [vmem:[#allocation5 + $0xd4] ss:$8 sps:$4 sm:$0xff]   ;;  %v1016_v19 = vld [vmem:[%s1708_s1] ss:$0 sm:$0xff] }
  0x5e   : > { %478 = vmatprep.subr.bf16.mxu1 %v1193_v12  ;;  %v1017_v20 = vld [vmem:[%s1709_s2] ss:$0 sm:$0xff]  ;;  %v1199_v21 = vld [vmem:[#allocation5 + $0x24] ss:$8 sps:$4 sm:$0xff]   ;;  %v308_v22 = vmul.f32 %v1083_v17, %v1016_v19  ;;  %v309_v23 = vmul.f32 %v1084_v18, %v1016_v19  ;;  %v1201_v24 = vld [vmem:[#allocation5 + $0x20] ss:$8 sps:$4 sm:$0xff]  }
  0x5f   : > { %620 = vmatpush1.bf16.msra.mxu0 %v1171_v4  ;;  %v1183_v25 = vld [vmem:[#allocation5 + $0xd0] ss:$8 sps:$4 sm:$0xff]   ;;  %v1205_v28 = vld [vmem:[#allocation5 + $0x34] ss:$8 sps:$4 sm:$0xff]   ;;  %v1184_v29 = vld [vmem:[#allocation5 + $0xe4] ss:$8 sps:$4 sm:$0xff]  }
  0x60   : > { %621 = vmatprep.subr.bf16.mxu0 %v1172_v5  ;;  %v317_v26 = vadd.f32 %v1017_v20, %v308_v22  ;;  %v318_v27 = vadd.f32 %v1017_v20, %v309_v23  ;;  %v1207_v31 = vld [vmem:[#allocation5 + $0x30] ss:$8 sps:$4 sm:$0xff]   ;;  %vm329_vm0 = vcmask 1040384   ;;  %v1211_v32 = vld [vmem:[#allocation5 + $0x44] ss:$8 sps:$4 sm:$0xff]   ;;  %vm666_vm4 = vcmask 1046528  }
  0x61   : > { %479 = vmatpush1.bf16.msra.mxu1 %v1195_v13  ;;  %v1186_v33 = vld [vmem:[#allocation5 + $0xe0] ss:$8 sps:$4 sm:$0xff]   ;;  %vm330_vm1 = vsmask.f32 256  ;;  %v1190_v36 = vld [vmem:[#allocation5 + $0xf4] ss:$8 sps:$4 sm:$0xff]  }
  0x62   : > { %480 = vmatprep.subr.bf16.mxu1 %v1199_v21  ;;  %v319_v30 = vpack.c.bf16 %v318_v27, %v317_v26  ;;  %v1213_v38 = vld [vmem:[#allocation5 + $0x40] ss:$8 sps:$4 sm:$0xff]   ;;  %vm331_vm2 = vmand %vm329_vm0, %vm330_vm1  ;;  %v1217_v39 = vld [vmem:[#allocation5 + $0x54] ss:$8 sps:$4 sm:$0xff]   ;;  %vm523_vm3 = vsmask.f32 7424 }
  0x63   : > { %622 = vmatpush1.bf16.msra.mxu0 %v1174_v6  ;;  %v1192_v40 = vld [vmem:[#allocation5 + $0xf0] ss:$8 sps:$4 sm:$0xff]   ;;  %v1198_v43 = vld [vmem:[#allocation5 + $0x104] ss:$8 sps:$4 sm:$0xff]   ;;  %v1225_v52 = vld [vmem:[#allocation5 + $0x60] ss:$8 sps:$4 sm:$0xff]  }
  0x64   : > { %623 = vmatprep.subr.bf16.mxu0 %v1175_v7  ;;  %v321_v34 = vshrl.u32 %v319_v30, 16  ;;  %v324_v35 = vshll.u32 %v319_v30, 16  ;;  %v1219_v46 = vld [vmem:[#allocation5 + $0x50] ss:$8 sps:$4 sm:$0xff]   ;;  %v1223_v49 = vld [vmem:[#allocation5 + $0x64] ss:$8 sps:$4 sm:$0xff]  }
  0x65   : > { %481 = vmatpush1.bf16.msra.mxu1 %v1201_v24  ;;  %v1196_v53 = vld [vmem:[#allocation5 + $0x100] ss:$8 sps:$4 sm:$0xff]   ;;  %v1229_v55 = vld [vmem:[#allocation5 + $0x74] ss:$8 sps:$4 sm:$0xff]   ;;  %v1231_v58 = vld [vmem:[#allocation5 + $0x70] ss:$8 sps:$4 sm:$0xff]  }
  0x66   : > { %482 = vmatprep.subr.bf16.mxu1 %v1205_v28  ;;  %v323_v37 = vrot.slane %v321_v34, 7  ;;  %v1204_v56 = vld [vmem:[#allocation5 + $0x114] ss:$8 sps:$4 sm:$0xff]   ;;  %v1202_v59 = vld [vmem:[#allocation5 + $0x110] ss:$8 sps:$4 sm:$0xff]   ;;  %s1014_s18 = sshll.u32 %s1585_s16, 4 }
  0x67   : > { %624 = vmatpush1.bf16.msra.mxu0 %v1177_v10  ;;  %v1210_v60 = vld [vmem:[#allocation5 + $0x124] ss:$8 sps:$4 sm:$0xff]   ;;  %v1208_v61 = vld [vmem:[#allocation5 + $0x120] ss:$8 sps:$4 sm:$0xff]   ;;  %v1216_v62 = vld [vmem:[#allocation5 + $0x134] ss:$8 sps:$4 sm:$0xff]  }
  0x68   : > { %625 = vmatprep.subr.bf16.mxu0 %v1178_v11  ;;  %v326_v41 = vor.u32 %v324_v35, %v323_v37  ;;  %v1609_v42 = vsel %vm331_vm2, %v323_v37, 0  ;;  %v1214_v63 = vld [vmem:[#allocation5 + $0x130] ss:$8 sps:$4 sm:$0xff]   ;;  %v1222_v1 = vld [vmem:[#allocation5 + $0x144] ss:$8 sps:$4 sm:$0xff]   ;;  %s288_s7 = scalar_lea.vmem [#allocation7], %s1014_s18 }
  0x69   : > { %483 = vmatpush1.bf16.msra.mxu1 %v1207_v31  ;;  %v532_v44 = vshll.u32 %v1609_v42, 16  ;;  %v1220_v2 = vld [vmem:[#allocation5 + $0x140] ss:$8 sps:$4 sm:$0xff]   ;;  %v1228_v3 = vld [vmem:[#allocation5 + $0x154] ss:$8 sps:$4 sm:$0xff]   ;;  %v668_v9 = vrot.slane %v1609_v42, 1 }
  0x6a   : > { %484 = vmatprep.subr.bf16.mxu1 %v1211_v32  ;;  %v332_v45 = vsel %vm331_vm2, 0, %v326_v41  ;;  %v1226_v4 = vld [vmem:[#allocation5 + $0x150] ss:$8 sps:$4 sm:$0xff]   ;;  %v1234_v5 = vld [vmem:[#allocation5 + $0x164] ss:$8 sps:$4 sm:$0xff]   ;;  %s875_s30 = sshll.u32 %s288_s7, 4  ;;  %s1621_s30 = int_to_ptr.vmem [resolvable:$true] %s875_s30 }
  0x6b   : > { %626 = vmatpush1.bf16.msra.mxu0 %v1180_v14  ;;  %v525_v47 = vshrl.u32 %v332_v45, 16  ;;  %v527_v48 = vshll.u32 %v332_v45, 16  ;;  %v534_v51 = vrot.slane %v532_v44, 1  ;;  %v1237_v6 = vld [vmem:[#allocation5 + $0x174] ss:$8 sps:$4 sm:$0xff]   ;;  %v667_v8 = vrot.slane %v332_v45, 1 }
  0x6c   : > { %627 = vmatprep.subr.bf16.mxu0 %v1181_v16  ;;  %v1235_v7 = vld [vmem:[#allocation5 + $0x170] ss:$8 sps:$4 sm:$0xff]   ;;  %v385_v16 = vshrl.u32 %v384_v15, 7  ;;  %s1079_s26 = sshll.u32 %s1467_s25, 8  ;;  %s857_s15 = scalar_lea.sflag [#allocation4], %s1585_s16 }
  0x6d   : > { %485 = vmatpush1.bf16.msra.mxu1 %v1213_v38  ;;  %v529_v50 = vrot.slane %v527_v48, 1  ;;  %v669_v10 = vsel %vm666_vm4, %v667_v8, %v668_v9  ;;  %v382_v18 = vld [vmem:[%s1711_s4] sm:$0x3]  ;;  %s1628_s8 = scalar_lea.hbm %s1712_s5, %s1079_s26  ;;  %s1296_s27 = scalar_lea.vmem %s1621_s30, 256 }
  0x6e   : > { %486 = vmatprep.subr.bf16.mxu1 %v1217_v39  ;;  %v386_v17 = vsub.s32 0, %v385_v16  ;;  %v390_v19 = vsub.s32 1, %v385_v16  ;;  %p1297_p4 = scmp.ne.s32.totalorder %s1621_s30, %s1296_s27  ;;  %s1407_s29 = smov [#allocation7]  }
  0x6f   : > { %628 = vmatpush1.bf16.msra.mxu0 %v1183_v25  ;;  %v530_v54 = vor.u32 %v529_v50, %v525_v47  ;;  %s1300_s19 = sshll.u32 %s1407_s29, 4  ;;  %s1301_s19 = int_to_ptr.vmem [resolvable:$false] %s1300_s19 }
  0x70   : > { %629 = vmatprep.subr.bf16.mxu0 %v1184_v29  ;;  %v387_v20 = vrot.slane %v382_v18, %v386_v17  ;;  %v391_v21 = vrot.slane %v382_v18, %v390_v19  ;;  %p1298_p6 = pnand %p1297_p4, %p1537_p12  ;;  %s1302_s10 = scalar_lea.vmem %s1301_s19, 512 }
  0x71   : > { %487 = vmatpush1.bf16.msra.mxu1 %v1219_v46  ;;  %v535_v57 = vsel %vm523_vm3, %v530_v54, %v534_v51  ;;  %p1303_p10 = scmp.lt.s32.totalorder %s1621_s30, %s1301_s19  ;;  %p1304_p13 = scmp.lt.s32.totalorder %s1302_s10, %s1296_s27 }
  0x72   : > { %488 = vmatprep.subr.bf16.mxu1 %v1223_v49  ;;  %p1299_p8 = pneg %p1298_p6 }
  0x73   : > { %630 = vmatpush1.bf16.msra.mxu0 %v1186_v33  ;;  %p1305_p3 = por %p1304_p13, %p1303_p10 }
  0x74   : > { %631 = vmatprep.subr.bf16.mxu0 %v1190_v36 }
  0x75   : > { %489 = vmatpush1.bf16.msra.mxu1 %v1225_v52  ;;  %p1306_p7 = pnand %p1305_p3, %p1299_p8 }
  0x76   : > { %490 = vmatprep.subr.bf16.mxu1 %v1229_v55 }
  0x77   : > { %632 = vmatpush1.bf16.msra.mxu0 %v1192_v40 }
  0x78   : > { %751 = vmatprep.subr.bf16.mxu0 %v1198_v43 }
  0x79   : > { %491 = vmatpush1.bf16.msra.mxu1 %v1231_v58 }
  0x7a   : > { %650 = vmatmul.mubr.bf16.vlgmr.msra.gmra.mrb[0].mxu0 %v535_v57 }
  0x7b   : > { %752 = vmatpush1.bf16.msra.mxu0 %v1196_v53  ;;  %783 = vmatprep.mubr.bf16.mxu0 %v1406_v0  ;;  %v1232_v0 = vld [vmem:[#allocation5 + $0x160] ss:$8 sps:$4 sm:$0xff]  }
  0x7c   : > { %753 = vmatprep.subr.bf16.mxu0 %v1204_v56  ;;  %509 = vmatmul.mubr.bf16.vlgmr.msra.gmra.mrb[0].mxu1 %v332_v45 }
  0x7f   : > { %754 = vmatpush1.bf16.msra.mxu0 %v1202_v59 }
  0x80   : > { %755 = vmatprep.subr.bf16.mxu0 %v1210_v60 }
  0x83   : > { %756 = vmatpush1.bf16.msra.mxu0 %v1208_v61 }
  0x84   : > { %757 = vmatprep.subr.bf16.mxu0 %v1216_v62 }
  0x87   : > { %758 = vmatpush1.bf16.msra.mxu0 %v1214_v63 }
  0x88   : > { %759 = vmatprep.subr.bf16.mxu0 %v1222_v1 }
  0x8b   : > { %760 = vmatpush1.bf16.msra.mxu0 %v1220_v2 }
  0x8c   : > { %761 = vmatprep.subr.bf16.mxu0 %v1228_v3 }
  0x8f   : > { %762 = vmatpush1.bf16.msra.mxu0 %v1226_v4 }
  0x90   : > { %763 = vmatprep.subr.bf16.mxu0 %v1234_v5 }
  0x93   : > { %764 = vmatpush1.bf16.msra.mxu0 %v1232_v0 }
  0x94   : > { %765 = vmatprep.subr.bf16.mxu0 %v1237_v6 }
  0x97   : > { %766 = vmatpush1.bf16.msra.mxu0 %v1235_v7 }
  0x9a   : > { %784 = vmatmul.mubr.bf16.vlgmr.msra.gmra.mrb[0].mxu0 %v669_v10 }
 0x14f   : > { %v510_v11 = vpop.f32.mrb[0].mxu1 }
 0x150   : > { %v512_v12 = vpop.f32.mrb[1].mxu1  ;;  %v519_v22 = vadd.f32 %v510_v11, %v387_v20 }
 0x151   : > { %v514_v13 = vpop.f32.mrb[2].mxu1  ;;  %v520_v23 = vadd.f32 %v512_v12, %v391_v21 }
 0x152   : > { %v516_v14 = vpop.f32.mrb[3].mxu1  ;;  %v521_v25 = vadd.f32 %v514_v13, %v387_v20 }
 0x153   : > { %v522_v28 = vadd.f32 %v516_v14, %v391_v21 }
 0x16d   : > { %v785_v24 = vpop.f32.mrb[0].mxu0 }
 0x16e   : > { %v1086_v26 = vadd.f32 %v785_v24, %v519_v22  ;;  %v787_v27 = vpop.f32.mrb[1].mxu0 }
 0x16f   : > { %v1088_v29 = vadd.f32 %v787_v27, %v520_v23  ;;  %v789_v30 = vpop.f32.mrb[2].mxu0 }
 0x170   : > { %v798_v31 = vmax.f32 %v1086_v26, 0.0  ;;  %v1090_v32 = vadd.f32 %v789_v30, %v521_v25  ;;  %v791_v33 = vpop.f32.mrb[3].mxu0 }
 0x171   : > { %v799_v34 = vmax.f32 %v1088_v29, 0.0  ;;  %v1092_v35 = vadd.f32 %v791_v33, %v522_v28 }
 0x172   : > { %v800_v36 = vmax.f32 %v1090_v32, 0.0  ;;  %v830_v39 = vmul.f32 %v798_v31, %v798_v31 }
 0x173   : > { %v1077_v37 = vpack.c.bf16 %v799_v34, %v798_v31  ;;  %v801_v38 = vmax.f32 %v1092_v35, 0.0  ;;  %v831_v42 = vmul.f32 %v799_v34, %v799_v34 }
 0x174   : > { %v816_v40 = vadd.f32 %v800_v36, %v798_v31  ;;  %v832_v41 = vmul.f32 %v800_v36, %v800_v36 }
 0x175   : > { %814 = vst [vmem:[%s288_s7] sm:$0xff] %v1077_v37  ;;  %v1078_v43 = vpack.c.bf16 %v801_v38, %v800_v36  ;;  %v823_v44 = vadd.f32 %v801_v38, %v799_v34  ;;  %v833_v45 = vmul.f32 %v801_v38, %v801_v38 }
 0x176   : > { %v817_v46 = vrot.slane %v816_v40, 4  ;;  %v834_v47 = vadd.f32 %v832_v41, %v830_v39 }
 0x177   : > { %815 = vst [vmem:[%s288_s7 + $0x8] sm:$0xff] %v1078_v43  ;;  %v824_v48 = vrot.slane %v823_v44, 4  ;;  %v841_v49 = vadd.f32 %v833_v45, %v831_v42 }
 0x178   : > { %v818_v50 = vadd.f32 %v817_v46, %v816_v40  ;;  %v835_v51 = vrot.slane %v834_v47, 4 }
 0x179   : > { %1309 = shalt.err (!%p1306_p7)
}
 0x17a   : > { %s1310_s11 = scalar_lea.hbm %s1628_s8, 256  ;;  %s1314_s12 = scalar_lea.hbm %s1712_s5, 512 }
 0x17b   : > { %p1311_p9 = scmp.ne.s32.totalorder %s1628_s8, %s1310_s11  ;;  %p1315_p5 = scmp.lt.u32.totalorder %s1628_s8, %s1712_s5 }
 0x17c   : > { %p1316_p11 = scmp.lt.u32.totalorder %s1314_s12, %s1310_s11  ;;  %p1318_p4 = scmp.lt.u32.totalorder %s1310_s11, %s1628_s8 }
 0x17d   : > { %p1312_p2 = pnand %p1311_p9, %p1537_p12 }
 0x17e   : > { %p1317_p1 = por %p1316_p11, %p1315_p5 }
 0x17f   : > { %p1313_p0 = pneg %p1312_p2 }
 0x180   : > { %p1319_p6 = por %p1318_p4, %p1317_p1 }
 0x182   : > { %p1320_p8 = pnand %p1319_p6, %p1313_p0 }
 0x184   : > { %1323 = shalt.err (!%p1320_p8)
}
 0x185   : > { %s1408_s27 = smov 128   ;;  %s1409_s19 = smov 8   ;;  %v825_v52 = vadd.f32 %v824_v48, %v823_v44  ;;  %v842_v53 = vrot.slane %v841_v49, 4  ;;  %v819_v54 = vrot.slane %v818_v50, 2  ;;  %v836_v55 = vadd.f32 %v835_v51, %v834_v47 }
 0x186   : > { %1103 = dma.vmem_to_hbm [thread:$0]  (%p1537_p12), %s1621_s30, 256, %s1628_s8, %s857_s15, %s1408_s27, %s1408_s27, %s1409_s19   ;;  %vm851_vm5 = vcmask 1041408  }
 0x187   : > { %v826_v56 = vrot.slane %v825_v52, 2  ;;  %v843_v57 = vadd.f32 %v842_v53, %v841_v49  ;;  %v820_v58 = vadd.f32 %v819_v54, %v818_v50  ;;  %v837_v59 = vrot.slane %v836_v55, 2  ;;  %s295_s30 = scalar_lea.vmem [#allocation8], %s1014_s18  ;;  %s1663_s11 = scalar_lea.hbm %s1713_s6, %s1079_s26 }
 0x188   : > { %s892_s8 = sshll.u32 %s295_s30, 4  ;;  %s862_s18 = scalar_lea.sflag [#allocation9], %s1585_s16  ;;  %s1665_s8 = int_to_ptr.vmem [resolvable:$true] %s892_s8 }
 0x189   : > { %v827_v60 = vadd.f32 %v826_v56, %v825_v52  ;;  %v844_v61 = vrot.slane %v843_v57, 2  ;;  %v821_v62 = vrot.slane %v820_v58, 1  ;;  %v838_v63 = vadd.f32 %v837_v59, %v836_v55  ;;  %s1324_s20 = scalar_lea.vmem %s1665_s8, 256  ;;  %s1410_s25 = smov [#allocation8]  }
 0x18a   : > { %p1325_p10 = scmp.ne.s32.totalorder %s1665_s8, %s1324_s20  ;;  %s1328_s7 = sshll.u32 %s1410_s25, 4  ;;  %s1329_s7 = int_to_ptr.vmem [resolvable:$false] %s1328_s7 }
 0x18b   : > { %v828_v1 = vrot.slane %v827_v60, 1  ;;  %v845_v2 = vadd.f32 %v844_v61, %v843_v57  ;;  %v839_v3 = vrot.slane %v838_v63, 1  ;;  %v822_v5 = vadd.f32 %v821_v62, %v820_v58  ;;  %s1330_s12 = scalar_lea.vmem %s1329_s7, 512  ;;  %p1331_p7 = scmp.lt.s32.totalorder %s1665_s8, %s1329_s7 }
 0x18c   : > { %p1326_p13 = pnand %p1325_p10, %p1537_p12  ;;  %p1332_p9 = scmp.lt.s32.totalorder %s1330_s12, %s1324_s20 }
 0x18d   : > { %v846_v4 = vrot.slane %v845_v2, 1  ;;  %v840_v0 = vadd.f32 %v839_v3, %v838_v63  ;;  %v829_v6 = vadd.f32 %v828_v1, %v827_v60 }
 0x18e   : > { %p1327_p3 = pneg %p1326_p13  ;;  %p1333_p2 = por %p1332_p9, %p1331_p7 }
 0x18f   : > { %v847_v7 = vadd.f32 %v846_v4, %v845_v2  ;;  %v849_v8 = vsel %vm329_vm0, %v822_v5, %v840_v0 }
 0x190   : > { %v852_v10 = vsel %vm851_vm5, %v849_v8, 0.0  ;;  %p1334_p0 = pnand %p1333_p2, %p1327_p3 }
 0x191   : > { %v850_v9 = vsel %vm329_vm0, %v829_v6, %v847_v7  ;;  %854 = vst [vmem:[%s295_s30] sm:$0xff] %v852_v10 }
 0x192   : > { %v853_v11 = vsel %vm851_vm5, %v850_v9, 0.0 }
 0x193   : > { %855 = vst [vmem:[%s295_s30 + $0x8] sm:$0xff] %v853_v11 }
 0x194   : > { %1337 = shalt.err (!%p1334_p0)
}
 0x195   : > { %s1338_s16 = scalar_lea.hbm %s1663_s11, 256  ;;  %s1342_s29 = scalar_lea.hbm %s1713_s6, 512 }
 0x196   : > { %p1339_p5 = scmp.ne.s32.totalorder %s1663_s11, %s1338_s16  ;;  %p1343_p4 = scmp.lt.u32.totalorder %s1663_s11, %s1713_s6 }
 0x197   : > { %p1344_p6 = scmp.lt.u32.totalorder %s1342_s29, %s1338_s16  ;;  %p1346_p10 = scmp.lt.u32.totalorder %s1338_s16, %s1663_s11 }
 0x198   : > { %p1340_p11 = pnand %p1339_p5, %p1537_p12 }
 0x199   : > { %p1345_p8 = por %p1344_p6, %p1343_p4 }
 0x19a   : > { %p1341_p1 = pneg %p1340_p11 }
 0x19b   : > { %p1347_p13 = por %p1346_p10, %p1345_p8 }
 0x19d   : > { %p1348_p3 = pnand %p1347_p13, %p1341_p1 }
 0x19f   : > { %1351 = shalt.err (!%p1348_p3)
}
 0x1a0   : > { %1104 = dma.vmem_to_hbm [thread:$0]  (%p1537_p12), %s1665_s8, 256, %s1663_s11, %s862_s18  }
 0x1a1 PF: > { %s904_s30 = sand.u32 1, %s1386_s21   ;;  %p1728_p7 = scmp.ne.s32.totalorder %s1718_s28, 0 }
 0x1a2   : > { %p1729_p9 = scmp.ge.s32.totalorder %s1398_s24, 2  ;;  %s905_s15 = scalar_lea.sflag [#allocation4], %s904_s30 }
 0x1a4   : > { %p1116_p2 = pnand %p1729_p9, %p1728_p7 }
 0x1a6   : > { %1377 = dma.done.wait (!%p1116_p2), %s905_s15, 256  }
 0x1a7   : > { %1379 = vsyncadd (!%p1116_p2), %s905_s15, 4294967040  ;;  %s914_s10 = scalar_lea.sflag [#allocation9], %s904_s30 }
 0x1a8   : > { %1381 = dma.done.wait (!%p1116_p2), %s914_s10, 256  }
 0x1a9   : > { %1383 = vsyncadd (!%p1116_p2), %s914_s10, 4294967040  ;;  %p24_p12 = scmp.ge.s32.totalorder %s1502_s9, 4   ;;  %s1730_s21 = smov %s1390_s22 }
 0x1aa   : > { %s1731_s22 = smov %s1394_s23  ;;  %s1732_s23 = smov %s1533_s13 }
 0x1ab   : > { %s1733_s24 = smov %s1502_s9  ;;  %26 = sbr.rel (!%p24_p12) target bundleno = 8 (0x8), region = 106 }
 0x1b2   :  { %919 = vsyncpa [#allocation3], 1 }
 0x1b3   :  { %921 = vsyncpa [#allocation3 + $0x1], 1 }
 0x1b4   :  { %922 = vsyncpa [#allocation6], 1 }
 0x1b5   :  { %923 = vsyncpa [#allocation4], 1 }
 0x1b6   :  { %925 = vsyncpa [#allocation4 + $0x1], 1 }
 0x1b7   :  { %926 = vsyncpa [#allocation9], 1 }
 0x1b8   :  { %928 = vsyncpa [#allocation9 + $0x1], 1 }

</bundles_post_ra>
